<compile_context>
chip_gen: v5e
topology: v5e:2x2
jax: 0.10.0
libtpu: 0.0.40
codegen_flags: <defaults>
</compile_context>

<pallas_src>
import functools

import jax
import jax.numpy as jnp
import numpy as np
from jax.experimental import pallas as pl
from jax.experimental.pallas import tpu as pltpu

# ----------------------------- model config ---------------------------------
N_BINS = 4
N_CATS = 2
CARDS = (3, 5)            # one categorical head per card
N_NUMS = 6
IN_FEATURES = N_BINS + N_CATS + N_NUMS       # 12
HIDDEN = 32
BOTTLENECK = 16
NUM_LAYERS = 4                                # -> encoder_layers = 2, decoder_layers = 1
ENC_LAYERS = NUM_LAYERS >> 1
DEC_LAYERS = NUM_LAYERS - ENC_LAYERS - 1
BATCH = 8

NUM_LO = N_BINS + N_CATS                      # lane offset of nums columns in the input (6)
HEAD_WIDTH = NUM_LO + N_NUMS + sum(CARDS)     # fused head layout width (20)
PAD = HIDDEN + 1                              # 33: all real lanes + one constant-1 bias lane
ONE_LANE = PAD - 1                            # lane that carries the constant 1
assert PAD >= max(IN_FEATURES, HIDDEN, BOTTLENECK, HEAD_WIDTH) + 1

# layer order in the slab: enc0..enc{E-1}, bottleneck, dec0..dec{D-1}, fused head
N_SLAB_LAYERS = ENC_LAYERS + 1 + DEC_LAYERS + 1
RELU_FLAGS = (True,) * ENC_LAYERS + (False,) + (True,) * DEC_LAYERS + (False,)


# ------------------------------- kernel -------------------------------------
def _deapstack_kernel(relu_flags, num_lo, n_nums, x_ref, w_ref, out_ref, xpad_ref):
    """x_ref: [B, 12] f32; w_ref: [L, PAD, PAD] bf16 (bias folded into row ONE_LANE);
    out_ref: [B, PAD] f32; xpad_ref: [B, PAD] f32 scratch."""
    batch = x_ref.shape[0]

    # --- build padded input on-chip: [x | zeros | 1 at lane ONE_LANE] -------
    lane2 = jax.lax.broadcasted_iota(jnp.int32, (batch, PAD), 1)
    xpad_ref[...] = jnp.where(lane2 == ONE_LANE, 1.0, 0.0).astype(jnp.float32)
    xpad_ref[:, :IN_FEATURES] = x_ref[...]         # masked lane store, lanes 0..11
    x = xpad_ref[...]

    # Per-column min/max over the batch; only the nums lanes carry real clamp
    # bounds, all other lanes get -inf/+inf (no-op clamp).  The fused head is
    # laid out so its nums columns sit at the SAME lanes as the input nums
    # columns, so no lane slice / roll is needed.
    col_min = jnp.min(x, axis=0, keepdims=True)    # [1, PAD]
    col_max = jnp.max(x, axis=0, keepdims=True)    # [1, PAD]
    lane1 = jax.lax.broadcasted_iota(jnp.int32, col_min.shape, 1)
    is_num = (lane1 >= num_lo) & (lane1 < num_lo + n_nums)
    lo = jnp.where(is_num, col_min, -jnp.inf)
    hi = jnp.where(is_num, col_max, jnp.inf)

    # --- serial MLP chain: bf16 MXU inputs, f32 accumulation, f32 elementwise
    h = x
    for i, do_relu in enumerate(relu_flags):       # statically unrolled
        h = jnp.dot(h.astype(jnp.bfloat16), w_ref[i],
                    preferred_element_type=jnp.float32)
        if do_relu:
            h = jnp.maximum(h, 0.0)

    # Clamp (only affects the nums lanes) and write one output block.
    out_ref[...] = jnp.minimum(jnp.maximum(h, lo), hi)


# --------------------------- host-side packing --------------------------------
def pack_params(params):
    """Pack every Linear into one [L, PAD, PAD] bf16 weight slab.

    Lane ONE_LANE carries a constant 1 through the stack: W[ONE_LANE, ONE_LANE]=1
    and the layer's bias vector lives in row ONE_LANE, so `h @ W` computes
    `h @ W_real + b` in a single MXU pass.
    Fused head layout (lanes): [bins(4) | pad(2) | nums(6) | cat_0(3) | cat_1(5) | 0-pad | 0].
    """
    ws = []

    def pad_wb(w, b, carry_one=True):
        w = np.asarray(w, np.float32)
        b = np.asarray(b, np.float32).reshape(-1)
        wp = np.zeros((PAD, PAD), np.float32)
        wp[: w.shape[0], : w.shape[1]] = w
        wp[ONE_LANE, : b.shape[0]] = b
        if carry_one:
            wp[ONE_LANE, ONE_LANE] = 1.0
        return wp

    for w, b in params["encoders"]:
        ws.append(pad_wb(w, b))
    ws.append(pad_wb(*params["bottleneck"]))
    for w, b in params["decoders"]:
        ws.append(pad_wb(w, b))

    head_w = np.zeros((PAD, PAD), np.float32)
    bw, bb = params["bins"]
    head_w[:HIDDEN, 0:N_BINS] = np.asarray(bw, np.float32)
    head_w[ONE_LANE, 0:N_BINS] = np.asarray(bb, np.float32).reshape(-1)
    nw, nb = params["nums"]
    head_w[:HIDDEN, NUM_LO:NUM_LO + N_NUMS] = np.asarray(nw, np.float32)
    head_w[ONE_LANE, NUM_LO:NUM_LO + N_NUMS] = np.asarray(nb, np.float32).reshape(-1)
    off = NUM_LO + N_NUMS
    for (cw, cb), card in zip(params["cats"], CARDS):
        head_w[:HIDDEN, off:off + card] = np.asarray(cw, np.float32)
        head_w[ONE_LANE, off:off + card] = np.asarray(cb, np.float32).reshape(-1)
        off += card
    ws.append(head_w)

    w_slab = jnp.asarray(np.stack(ws, axis=0), dtype=jnp.bfloat16)   # [L, PAD, PAD]
    return w_slab


# ------------------------------ wrapper --------------------------------------
@jax.jit
def deapstack_forward(x, w_slab):
    batch = x.shape[0]

    vmem = pl.BlockSpec(memory_space=pltpu.MemorySpace.VMEM)
    kernel = functools.partial(_deapstack_kernel, RELU_FLAGS, NUM_LO, N_NUMS)

    flops = 2 * batch * PAD * PAD * N_SLAB_LAYERS
    bytes_accessed = 4 * batch * IN_FEATURES + 2 * int(w_slab.size) + 4 * batch * PAD

    out = pl.pallas_call(
        kernel,
        out_shape=jax.ShapeDtypeStruct((batch, PAD), jnp.float32),
        in_specs=[vmem, vmem],
        out_specs=vmem,
        scratch_shapes=[pltpu.VMEM((batch, PAD), jnp.float32)],
        cost_estimate=pl.CostEstimate(
            flops=flops, transcendentals=0, bytes_accessed=bytes_accessed),
    )(x, w_slab)

    bins_out = out[:, :N_BINS]
    nums_out = out[:, NUM_LO:NUM_LO + N_NUMS]
    cats_out = []
    off = NUM_LO + N_NUMS
    for card in CARDS:
        cats_out.append(out[:, off:off + card])
        off += card
    return {"bins": bins_out, "cats": cats_out, "nums": nums_out}


# --------------------------- parameter init ----------------------------------
def _init_linear(key, fan_in, fan_out):
    """PyTorch-style uniform(-1/sqrt(fan_in), 1/sqrt(fan_in)); W stored [in, out]."""
    kw, kb = jax.random.split(key)
    bound = 1.0 / np.sqrt(fan_in)
    w = jax.random.uniform(kw, (fan_in, fan_out), jnp.float32, -bound, bound)
    b = jax.random.uniform(kb, (1, fan_out), jnp.float32, -bound, bound)
    return w, b


def init_params(key):
    params = {"encoders": [], "decoders": [], "cats": []}
    enc_dims = [IN_FEATURES] + [HIDDEN] * ENC_LAYERS
    for fi, fo in zip(enc_dims, enc_dims[1:]):
        key, sub = jax.random.split(key)
        params["encoders"].append(_init_linear(sub, fi, fo))
    key, sub = jax.random.split(key)
    params["bottleneck"] = _init_linear(sub, HIDDEN, BOTTLENECK)
    dec_dims = [BOTTLENECK] + [HIDDEN] * DEC_LAYERS
    for fi, fo in zip(dec_dims, dec_dims[1:]):
        key, sub = jax.random.split(key)
        params["decoders"].append(_init_linear(sub, fi, fo))
    key, sub = jax.random.split(key)
    params["bins"] = _init_linear(sub, HIDDEN, N_BINS)
    for card in CARDS:
        key, sub = jax.random.split(key)
        params["cats"].append(_init_linear(sub, HIDDEN, card))
    key, sub = jax.random.split(key)
    params["nums"] = _init_linear(sub, HIDDEN, N_NUMS)
    return params


# ------------------------- pure-JAX reference (f32) ---------------------------
def reference_forward(x, params):
    lo = N_BINS + N_CATS
    num_min = jnp.min(x[:, lo:lo + N_NUMS], axis=0)
    num_max = jnp.max(x[:, lo:lo + N_NUMS], axis=0)
    h = x
    for w, b in params["encoders"]:
        h = jax.nn.relu(h @ w + b)
    h = h @ params["bottleneck"][0] + params["bottleneck"][1]
    for w, b in params["decoders"]:
        h = jax.nn.relu(h @ w + b)
    bins = h @ params["bins"][0] + params["bins"][1]
    cats = [h @ w + b for w, b in params["cats"]]
    nums = h @ params["nums"][0] + params["nums"][1]
    nums = jnp.clip(nums, num_min[None, :], num_max[None, :])
    return {"bins": bins, "cats": cats, "nums": nums}


# --------------------------------- main ---------------------------------------
if __name__ == "__main__":
    key = jax.random.PRNGKey(0)
    key, pkey, xkey = jax.random.split(key, 3)
    params = init_params(pkey)
    x = jax.random.normal(xkey, (BATCH, IN_FEATURES), jnp.float32)

    w_slab = pack_params(params)
    out = deapstack_forward(x, w_slab)
    jax.block_until_ready(out)

    # Kernel runs the 5-matmul chain with bf16 MXU inputs (f32 accumulation),
    # so compare against the f32 reference with a correspondingly relaxed
    # tolerance (still far tighter than any structural/logic bug would allow).
    ref = reference_forward(x, params)
    TOL = dict(rtol=3e-2, atol=3e-2)
    np.testing.assert_allclose(np.asarray(out["bins"]), np.asarray(ref["bins"]), **TOL)
    for a, b in zip(out["cats"], ref["cats"]):
        np.testing.assert_allclose(np.asarray(a), np.asarray(b), **TOL)
    np.testing.assert_allclose(np.asarray(out["nums"]), np.asarray(ref["nums"]), **TOL)

    print("KERNEL_OK")
</pallas_src>

<mosaic_0001>
module attributes {stable_mosaic.version = 11 : i64} {
  func.func @_deapstack_kernel(%arg0: memref<8x12xf32, #tpu.memory_space<vmem>>, %arg1: memref<5x33x33xbf16, #tpu.memory_space<vmem>>, %arg2: memref<8x33xf32, #tpu.memory_space<vmem>>, %arg3: memref<8x33xf32, #tpu.memory_space<vmem>>) attributes {dimension_semantics = [], scalar_prefetch = 0 : i64, scratch_operands = 1 : i64, tpu.core_type = #tpu.core_type<tc>} {
    %0 = tpu.iota {dimensions = array<i32: 1>} : vector<8x33xi32>
    %c32_i32 = arith.constant 32 : i32
    %1 = vector.broadcast %c32_i32 : i32 to vector<8x33xi32>
    %2 = arith.cmpi eq, %0, %1 : vector<8x33xi32>
    %cst = arith.constant 1.000000e+00 : f32
    %cst_0 = arith.constant 0.000000e+00 : f32
    %3 = vector.broadcast %cst : f32 to vector<8x33xf32>
    %4 = vector.broadcast %cst_0 : f32 to vector<8x33xf32>
    %5 = arith.select %2, %3, %4 : vector<8x33xi1>, vector<8x33xf32>
    %c0 = arith.constant 0 : index
    %c0_1 = arith.constant 0 : index
    %6 = vector.load %arg3[%c0, %c0_1] : memref<8x33xf32, #tpu.memory_space<vmem>>, vector<8x33xf32>
    tpu.vector_store %arg3[%c0, %c0_1], %5 {strides = array<i32>} : memref<8x33xf32, #tpu.memory_space<vmem>>, vector<8x33xf32>,
    %c0_2 = arith.constant 0 : index
    %c0_3 = arith.constant 0 : index
    %7 = vector.load %arg0[%c0_2, %c0_3] : memref<8x12xf32, #tpu.memory_space<vmem>>, vector<8x12xf32>
    %c0_4 = arith.constant 0 : index
    %c0_5 = arith.constant 0 : index
    %8 = vector.load %arg3[%c0_4, %c0_5] : memref<8x33xf32, #tpu.memory_space<vmem>>, vector<8x12xf32>
    tpu.vector_store %arg3[%c0_4, %c0_5], %7 {strides = array<i32>} : memref<8x33xf32, #tpu.memory_space<vmem>>, vector<8x12xf32>,
    %c0_6 = arith.constant 0 : index
    %c0_7 = arith.constant 0 : index
    %9 = vector.load %arg3[%c0_6, %c0_7] : memref<8x33xf32, #tpu.memory_space<vmem>>, vector<8x33xf32>
    %cst_8 = arith.constant dense<0x7F800000> : vector<33xf32>
    %10 = vector.multi_reduction <minimumf>, %9, %cst_8 [0] : vector<8x33xf32> to vector<33xf32>
    %11 = vector.shape_cast %10 : vector<33xf32> to vector<1x33xf32>
    %cst_9 = arith.constant dense<0xFF800000> : vector<33xf32>
    %12 = vector.multi_reduction <maximumf>, %9, %cst_9 [0] : vector<8x33xf32> to vector<33xf32>
    %13 = vector.shape_cast %12 : vector<33xf32> to vector<1x33xf32>
    %14 = tpu.iota {dimensions = array<i32: 1>} : vector<1x33xi32>
    %c6_i32 = arith.constant 6 : i32
    %15 = vector.broadcast %c6_i32 : i32 to vector<1x33xi32>
    %16 = arith.cmpi sge, %14, %15 : vector<1x33xi32>
    %c12_i32 = arith.constant 12 : i32
    %17 = vector.broadcast %c12_i32 : i32 to vector<1x33xi32>
    %18 = arith.cmpi slt, %14, %17 : vector<1x33xi32>
    %19 = arith.andi %16, %18 : vector<1x33xi1>
    %cst_10 = arith.constant 0xFF800000 : f32
    %20 = vector.broadcast %cst_10 : f32 to vector<1x33xf32>
    %21 = arith.select %19, %11, %20 : vector<1x33xi1>, vector<1x33xf32>
    %cst_11 = arith.constant 0x7F800000 : f32
    %22 = vector.broadcast %cst_11 : f32 to vector<1x33xf32>
    %23 = arith.select %19, %13, %22 : vector<1x33xi1>, vector<1x33xf32>
    %24 = arith.truncf %9 : vector<8x33xf32> to vector<8x33xbf16>
    %c0_12 = arith.constant 0 : index
    %c0_13 = arith.constant 0 : index
    %c0_14 = arith.constant 0 : index
    %25 = vector.load %arg1[%c0_12, %c0_13, %c0_14] : memref<5x33x33xbf16, #tpu.memory_space<vmem>>, vector<1x33x33xbf16>
    %26 = vector.shape_cast %25 : vector<1x33x33xbf16> to vector<33x33xbf16>
    %cst_15 = arith.constant dense<0.000000e+00> : vector<8x33xf32>
    %27 = tpu.matmul %24, %26, %cst_15 {dimension_numbers = #tpu.dot_dimension_numbers<[1], [0], [0], [1], [0, 0, 1, 1], [], []>} : vector<8x33xbf16>, vector<33x33xbf16>, vector<8x33xf32> -> vector<8x33xf32>
    %cst_16 = arith.constant 0.000000e+00 : f32
    %28 = vector.broadcast %cst_16 : f32 to vector<8x33xf32>
    %29 = arith.maximumf %27, %28 : vector<8x33xf32>
    %30 = arith.truncf %29 : vector<8x33xf32> to vector<8x33xbf16>
    %c1 = arith.constant 1 : index
    %c0_17 = arith.constant 0 : index
    %c0_18 = arith.constant 0 : index
    %31 = vector.load %arg1[%c1, %c0_17, %c0_18] : memref<5x33x33xbf16, #tpu.memory_space<vmem>>, vector<1x33x33xbf16>
    %32 = vector.shape_cast %31 : vector<1x33x33xbf16> to vector<33x33xbf16>
    %cst_19 = arith.constant dense<0.000000e+00> : vector<8x33xf32>
    %33 = tpu.matmul %30, %32, %cst_19 {dimension_numbers = #tpu.dot_dimension_numbers<[1], [0], [0], [1], [0, 0, 1, 1], [], []>} : vector<8x33xbf16>, vector<33x33xbf16>, vector<8x33xf32> -> vector<8x33xf32>
    %cst_20 = arith.constant 0.000000e+00 : f32
    %34 = vector.broadcast %cst_20 : f32 to vector<8x33xf32>
    %35 = arith.maximumf %33, %34 : vector<8x33xf32>
    %36 = arith.truncf %35 : vector<8x33xf32> to vector<8x33xbf16>
    %c2 = arith.constant 2 : index
    %c0_21 = arith.constant 0 : index
    %c0_22 = arith.constant 0 : index
    %37 = vector.load %arg1[%c2, %c0_21, %c0_22] : memref<5x33x33xbf16, #tpu.memory_space<vmem>>, vector<1x33x33xbf16>
    %38 = vector.shape_cast %37 : vector<1x33x33xbf16> to vector<33x33xbf16>
    %cst_23 = arith.constant dense<0.000000e+00> : vector<8x33xf32>
    %39 = tpu.matmul %36, %38, %cst_23 {dimension_numbers = #tpu.dot_dimension_numbers<[1], [0], [0], [1], [0, 0, 1, 1], [], []>} : vector<8x33xbf16>, vector<33x33xbf16>, vector<8x33xf32> -> vector<8x33xf32>
    %40 = arith.truncf %39 : vector<8x33xf32> to vector<8x33xbf16>
    %c3 = arith.constant 3 : index
    %c0_24 = arith.constant 0 : index
    %c0_25 = arith.constant 0 : index
    %41 = vector.load %arg1[%c3, %c0_24, %c0_25] : memref<5x33x33xbf16, #tpu.memory_space<vmem>>, vector<1x33x33xbf16>
    %42 = vector.shape_cast %41 : vector<1x33x33xbf16> to vector<33x33xbf16>
    %cst_26 = arith.constant dense<0.000000e+00> : vector<8x33xf32>
    %43 = tpu.matmul %40, %42, %cst_26 {dimension_numbers = #tpu.dot_dimension_numbers<[1], [0], [0], [1], [0, 0, 1, 1], [], []>} : vector<8x33xbf16>, vector<33x33xbf16>, vector<8x33xf32> -> vector<8x33xf32>
    %cst_27 = arith.constant 0.000000e+00 : f32
    %44 = vector.broadcast %cst_27 : f32 to vector<8x33xf32>
    %45 = arith.maximumf %43, %44 : vector<8x33xf32>
    %46 = arith.truncf %45 : vector<8x33xf32> to vector<8x33xbf16>
    %c4 = arith.constant 4 : index
    %c0_28 = arith.constant 0 : index
    %c0_29 = arith.constant 0 : index
    %47 = vector.load %arg1[%c4, %c0_28, %c0_29] : memref<5x33x33xbf16, #tpu.memory_space<vmem>>, vector<1x33x33xbf16>
    %48 = vector.shape_cast %47 : vector<1x33x33xbf16> to vector<33x33xbf16>
    %cst_30 = arith.constant dense<0.000000e+00> : vector<8x33xf32>
    %49 = tpu.matmul %46, %48, %cst_30 {dimension_numbers = #tpu.dot_dimension_numbers<[1], [0], [0], [1], [0, 0, 1, 1], [], []>} : vector<8x33xbf16>, vector<33x33xbf16>, vector<8x33xf32> -> vector<8x33xf32>
    %50 = vector.broadcast %21 : vector<1x33xf32> to vector<8x33xf32>
    %51 = arith.maximumf %49, %50 : vector<8x33xf32>
    %52 = vector.broadcast %23 : vector<1x33xf32> to vector<8x33xf32>
    %53 = arith.minimumf %51, %52 : vector<8x33xf32>
    %c0_31 = arith.constant 0 : index
    %c0_32 = arith.constant 0 : index
    %54 = vector.load %arg2[%c0_31, %c0_32] : memref<8x33xf32, #tpu.memory_space<vmem>>, vector<8x33xf32>
    tpu.vector_store %arg2[%c0_31, %c0_32], %53 {strides = array<i32>} : memref<8x33xf32, #tpu.memory_space<vmem>>, vector<8x33xf32>,
    return
  }
}

</mosaic_0001>

<bundles_post_ra>
// kernel: deapstack_forward.1
= control target key start
LH: loop header
LB: loop body
LE: loop exit
PB: predicated region body
PF: predicated region fallthrough
CT: control target
= control target key end

     0   :  { %7 = vsyncpa [#allocation4], 0  ;;  %s447_s0 = inlined_call_operand.hbm [shape: f32[8,12], index: 0, kind: input, shape index: {}]   ;;  %s448_s1 = inlined_call_operand.hbm [shape: bf16[5,33,33], index: 1, kind: input, shape index: {}]   ;;  %s449_s2 = inlined_call_operand.vmem [shape: f32[8,33], index: 2, kind: output, shape index: {}]  }
   0x1   :  { %s14_s11 = sshll.u32 %s447_s0, 4  ;;  %s15_s11 = int_to_ptr.hbm [resolvable:$true] %s14_s11 }
   0x2   :  { %8 = vsyncpa [#allocation6], 0  ;;  %s403_s12 = smov [#allocation3]   ;;  %s24_s16 = sshll.u32 %s448_s1, 4  ;;  %s25_s16 = int_to_ptr.hbm [resolvable:$true] %s24_s16 }
   0x3   :  { %s16_s13 = sshll.u32 %s403_s12, 4  ;;  %s404_s17 = smov [#allocation5]   ;;  %s17_s13 = int_to_ptr.vmem [resolvable:$true] %s16_s13 }
   0x4   :  { %19 = dma.hbm_to_vmem [thread:$0]  %s15_s11, 128, %s17_s13, [#allocation4]  }
   0x5   :  { %s26_s18 = sshll.u32 %s404_s17, 4  ;;  %s405_s19 = smov 64   ;;  %s27_s18 = int_to_ptr.vmem [resolvable:$true] %s26_s18 }
   0x6   :  { %s406_s20 = smov 4  }
   0x7   :  { %32 = dma.hbm_to_vmem [thread:$0]  %s25_s16, 1600, %s27_s18, [#allocation6], %s405_s19, %s405_s19, %s406_s20  }
   0x8   :  { %399 = dma.done.wait [#allocation4], 128  }
   0x9   :  { %400 = vsyncadd [#allocation4], 4294967168 }
   0xa   :  { %401 = dma.done.wait [#allocation6], 1600  }
   0xb   :  { %402 = vsyncadd [#allocation6], 4294965696  ;;  %v42_v0 = vlaneseq  ;;  %vm46_vm0 = vcmask 269312   ;;  %v407_v2 = vmov 0.0   ;;  %vm95_vm2 = vcmask 1040384   ;;  %v48_v6 = vld [vmem:[#allocation3] sm:$0xff] }
   0xc   :  { %vm49_vm3 = vcmask 97280   ;;  %v76_v4 = vld [vmem:[#allocation5 + $0x10] sm:$0x1]  ;;  %v121_v7 = vld [vmem:[#allocation5 + $0x24] sm:$0x1]  ;;  %v408_v8 = vmov 0  }
   0xd   :  { %v430_v1 = vand.u32 127, %v42_v0  ;;  %v86_v5 = vunpack.c.l.b16 %v76_v4  ;;  %v97_v9 = vsel %vm95_vm2, 65535, %v408_v8  ;;  %v131_v10 = vunpack.c.l.b16 %v121_v7  ;;  %v336_v15 = vld [vmem:[#allocation5 + $0x8] sm:$0xff]  ;;  %v338_v16 = vld [vmem:[#allocation5 + $0x1c] sm:$0xff]  ;;  %v337_v20 = vld [vmem:[#allocation5 + $0x14] sm:$0xff] }
   0xe   :  { %v335_v17 = vld [vmem:[#allocation5] sm:$0xff]  ;;  %v163_v21 = vld [vmem:[#allocation5 + $0x38] sm:$0x1]  ;;  %v340_v25 = vld [vmem:[#allocation5 + $0x30] sm:$0xff] }
   0xf   :  { %vm44_vm1 = vcmp.eq.s32.totalorder %v430_v1, 32  ;;  %v89_v11 = vpack.c.b16 %v86_v5, %v86_v5  ;;  %v134_v12 = vpack.c.b16 %v131_v10, %v131_v10  ;;  %v173_v22 = vunpack.c.l.b16 %v163_v21  ;;  %v339_v30 = vld [vmem:[#allocation5 + $0x28] sm:$0xff]  ;;  %v341_v40 = vld [vmem:[#allocation5 + $0x3c] sm:$0xff]  ;;  %v343_v49 = vld [vmem:[#allocation5 + $0x50] sm:$0xff] }
  0x10   :  { %v45_v3 = vsel %vm44_vm1, 1.0, %v407_v2  ;;  %v204_v31 = vld [vmem:[#allocation5 + $0x4c] sm:$0x1]  ;;  %v342_v35 = vld [vmem:[#allocation5 + $0x44] sm:$0xff]  ;;  %v246_v41 = vld [vmem:[#allocation5 + $0x60] sm:$0x1] }
  0x11   :  { %47 = vst.msk [vmem:[#allocation2] sm:$0xff] %vm46_vm0, %v45_v3  ;;  %v99_v13 = vand.u32 %v97_v9, %v89_v11  ;;  %v141_v14 = vand.u32 %v134_v12, %v97_v9  ;;  %v176_v23 = vpack.c.b16 %v173_v22, %v173_v22  ;;  %v214_v32 = vunpack.c.l.b16 %v204_v31  ;;  %v344_v45 = vld [vmem:[#allocation5 + $0x58] sm:$0xff] }
  0x12   :  { %50 = vst.msk [vmem:[#allocation2] sm:$0xff] %vm49_vm3, %v48_v6  ;;  %v256_v42 = vunpack.c.l.b16 %v246_v41  ;;  %vm66_vm4 = vcmp.ge.s32.totalorder %v430_v1, 6  ;;  %vm67_vm5 = vcmp.lt.s32.totalorder %v430_v1, 12 }
  0x13   :  { %106 = vmatpush.bf16.msra.mxu0 %v99_v13  ;;  %148 = vmatpush.bf16.msra.mxu1 %v141_v14  ;;  %v183_v24 = vand.u32 %v176_v23, %v97_v9  ;;  %v217_v33 = vpack.c.b16 %v214_v32, %v214_v32  ;;  %vm68_vm6 = vmand %vm66_vm4, %vm67_vm5 }
  0x14   :  { %v259_v43 = vpack.c.b16 %v256_v42, %v256_v42 }
  0x15   :  { %190 = vmatpush.bf16.msra.mxu2 %v183_v24  ;;  %v224_v34 = vand.u32 %v217_v33, %v97_v9 }
  0x16   :  { %v266_v44 = vand.u32 %v259_v43, %v97_v9 }
  0x17   :  { %107 = vmatpush.bf16.msra.mxu0 %v336_v15  ;;  %149 = vmatpush.bf16.msra.mxu1 %v338_v16 }
  0x18   :  { %231 = vmatpush.bf16.msra.mxu3 %v224_v34 }
  0x19   :  { %v51_v18 = vld [vmem:[#allocation2] sm:$0xff]  ;;  %191 = vmatpush.bf16.msra.mxu2 %v340_v25 }
  0x1a   :  { %v71_v19 = vpack.c.bf16 %v51_v18, %v51_v18  ;;  %v52_v54 = vsel %vm46_vm0, %v51_v18, inf  ;;  %v59_v55 = vsel %vm46_vm0, %v51_v18, -inf }
  0x1b   :  { %108 = vmatpush.bf16.msra.mxu0 %v335_v17  ;;  %150 = vmatpush.bf16.msra.mxu1 %v337_v20  ;;  %v53_v56 = vrot.slane %v52_v54, 4  ;;  %v60_v57 = vrot.slane %v59_v55, 4 }
  0x1c   :  { %232 = vmatpush.bf16.msra.mxu3 %v342_v35 }
  0x1d   :  { %192 = vmatpush.bf16.msra.mxu2 %v339_v30  ;;  %v54_v58 = vmin.f32 %v52_v54, %v53_v56  ;;  %v61_v59 = vmax.f32 %v59_v55, %v60_v57 }
  0x1e   :  { %298 = vmatmul.msk.bf16.vlgmr.msra.gmra.mxu0 %vm46_vm0, %v71_v19 }
  0x1f   :  { %273 = vmatpush.bf16.msrb.mxu0 %v266_v44  ;;  %v55_v60 = vrot.slane %v54_v58, 2  ;;  %v62_v61 = vrot.slane %v61_v59, 2 }
  0x20   :  { %233 = vmatpush.bf16.msra.mxu3 %v341_v40 }
  0x21   :  { %v56_v62 = vmin.f32 %v54_v58, %v55_v60  ;;  %v63_v63 = vmax.f32 %v61_v59, %v62_v61 }
  0x23   :  { %274 = vmatpush.bf16.msrb.mxu0 %v344_v45  ;;  %v57_v0 = vrot.slane %v56_v62, 1  ;;  %v64_v2 = vrot.slane %v63_v63, 1 }
  0x25   :  { %v58_v3 = vmin.f32 %v56_v62, %v57_v0  ;;  %v65_v4 = vmax.f32 %v63_v63, %v64_v2 }
  0x27   :  { %275 = vmatpush.bf16.msrb.mxu0 %v343_v49  ;;  %v69_v5 = vsel %vm68_vm6, %v58_v3, -inf  ;;  %v70_v6 = vsel %vm68_vm6, %v65_v4, inf }
  0x9b   :  { %v110_v26 = vpop.f32.mrf.mxu0 }
  0x9c   :  { %v114_v27 = vmax.f32 %v110_v26, 0.0 }
  0x9e   :  { %v115_v28 = vpack.c.bf16 %v114_v27, %v114_v27 }
  0xa0   :  { %307 = vmatmul.msk.bf16.vlgmr.msra.gmra.mxu1 %vm46_vm0, %v115_v28 }
  0xa3   :  { %v112_v29 = vpop.f32.mrf.mxu0 }
 0x11d   :  { %v152_v36 = vpop.f32.mrf.mxu1 }
 0x11e   :  { %v156_v37 = vmax.f32 %v152_v36, 0.0 }
 0x120   :  { %v157_v38 = vpack.c.bf16 %v156_v37, %v156_v37 }
 0x122   :  { %316 = vmatmul.msk.bf16.vlgmr.msra.gmra.mxu2 %vm46_vm0, %v157_v38 }
 0x125   :  { %v154_v39 = vpop.f32.mrf.mxu1 }
 0x1a5   :  { %v194_v46 = vpop.f32.mrf.mxu2 }
 0x1a6   :  { %v198_v47 = vpack.c.bf16 %v194_v46, %v194_v46 }
 0x1a8   :  { %325 = vmatmul.msk.bf16.vlgmr.msra.gmra.mxu3 %vm46_vm0, %v198_v47 }
 0x1ad   :  { %v196_v48 = vpop.f32.mrf.mxu2 }
 0x22b   :  { %v235_v50 = vpop.f32.mrf.mxu3 }
 0x22c   :  { %v239_v51 = vmax.f32 %v235_v50, 0.0 }
 0x22e   :  { %v240_v52 = vpack.c.bf16 %v239_v51, %v239_v51 }
 0x230   :  { %334 = vmatmul.msk.bf16.vlgmr.msrb.gmra.mxu0 %vm46_vm0, %v240_v52 }
 0x233   :  { %v237_v53 = vpop.f32.mrf.mxu3 }
 0x2ad   :  { %v277_v7 = vpop.f32.mrf.mxu0 }
 0x2ae   :  { %v281_v8 = vmax.f32 %v277_v7, %v69_v5 }
 0x2b0   :  { %v282_v9 = vmin.f32 %v281_v8, %v70_v6 }
 0x2b2   :  { %283 = vst.msk [vmem:[%s449_s2] sm:$0xff] %vm46_vm0, %v282_v9 }
 0x2b5   :  { %v279_v10 = vpop.f32.mrf.mxu0 }
 0x2b6   :  { %288 = vsyncpa [#allocation4], 1 }
 0x2b7   :  { %289 = vsyncpa [#allocation6], 1 }

</bundles_post_ra>
